<compile_context>
chip_gen: v7x
topology: tpu7x:2x2x1
jax: 0.10.0
libtpu: 0.0.40
codegen_flags: <defaults>
</compile_context>

<pallas_src>
import functools
import math

import jax
import jax.numpy as jnp
from jax.experimental import pallas as pl
from jax.experimental.pallas import tpu as pltpu

LANES = 512            # lane-dense last dim (multiple of 128)
SUBLANES = 8
MAX_BLOCK_ROWS = 512   # 512 x 512 x 4B = 1 MiB per stream tile (v5e-safe)


# ----------------------------------------------------------------------------
# Static slab layout helpers (run once at init; no pad/concat in the hot path)
# ----------------------------------------------------------------------------
def _param_rows(n_elems):
    """Rows of a (rows, 512) slab holding n_elems, rounded up to 8 sublanes."""
    rows = -(-max(n_elems, 1) // LANES)
    return -(-rows // SUBLANES) * SUBLANES


def _choose_block_rows(row_counts):
    """Largest block height <= MAX_BLOCK_ROWS that divides every param's rows."""
    g = 0
    for r in row_counts:
        g = math.gcd(g, r)
    g = max(g, SUBLANES)
    br = min(g, MAX_BLOCK_ROWS)
    br -= br % SUBLANES
    while g % br:
        br -= SUBLANES
    return br


# ----------------------------------------------------------------------------
# Fused kernel (one grid step = one (br, 512) block of the combined slab):
#     pavg_new = avg * pavg + (1 - avg) * parm
#     psum[i]  = sum(parm_block ** 2)      (per-block partial sum, lane-dense)
# parm is read from HBM exactly once; no persistent scratch; no carried state.
# ----------------------------------------------------------------------------
def _fused_ema_norm_kernel(avg_ref, pavg_ref, parm_ref, out_ref, psum_ref):
    a = avg_ref[0]                                     # SMEM scalar
    p = parm_ref[...]
    out_ref[...] = a * pavg_ref[...] + (1.0 - a) * p
    s = jnp.sum(p * p)                                 # tile-local reduction
    psum_ref[...] = jnp.zeros(psum_ref.shape, jnp.float32) + s


def _norm_kernel(parm_ref, psum_ref):
    p = parm_ref[...]
    s = jnp.sum(p * p)
    psum_ref[...] = jnp.zeros(psum_ref.shape, jnp.float32) + s


@functools.lru_cache(maxsize=None)
def _build_fused(R, W, br, num_blocks):
    call = pl.pallas_call(
        _fused_ema_norm_kernel,
        out_shape=(jax.ShapeDtypeStruct((R, W), jnp.float32),
                   jax.ShapeDtypeStruct((num_blocks, SUBLANES, 128), jnp.float32)),
        grid_spec=pltpu.PrefetchScalarGridSpec(
            num_scalar_prefetch=0,
            grid=(num_blocks,),
            in_specs=[pl.BlockSpec(memory_space=pltpu.MemorySpace.SMEM),       # avg
                      pl.BlockSpec((br, W), lambda i: (i, 0)),                  # pavg
                      pl.BlockSpec((br, W), lambda i: (i, 0))],                 # parm
            out_specs=(pl.BlockSpec((br, W), lambda i: (i, 0)),                 # pavg_new
                       pl.BlockSpec((1, SUBLANES, 128), lambda i: (i, 0, 0))),  # partial sums
        ),
        compiler_params=pltpu.CompilerParams(
            dimension_semantics=("parallel",)),        # no carried state -> megacore OK
        input_output_aliases={1: 0},                   # in-place pavg update
    )

    def composite(avg_arr, pavg_slab, parm_slab, onehot):
        new_pavg, psum = call(avg_arr, pavg_slab, parm_slab)
        block_sq = psum[:, 0, 0]                       # (num_blocks,) per-block sums
        norms = jnp.sqrt(block_sq @ onehot)            # tiny per-parameter segment sum
        return new_pavg, norms

    return jax.jit(composite, donate_argnums=(1,))


@functools.lru_cache(maxsize=None)
def _build_norms(R, W, br, num_blocks):
    call = pl.pallas_call(
        _norm_kernel,
        out_shape=jax.ShapeDtypeStruct((num_blocks, SUBLANES, 128), jnp.float32),
        grid_spec=pltpu.PrefetchScalarGridSpec(
            num_scalar_prefetch=0,
            grid=(num_blocks,),
            in_specs=[pl.BlockSpec((br, W), lambda i: (i, 0))],
            out_specs=pl.BlockSpec((1, SUBLANES, 128), lambda i: (i, 0, 0)),
        ),
        compiler_params=pltpu.CompilerParams(dimension_semantics=("parallel",)),
    )

    def composite(parm_slab, onehot):
        psum = call(parm_slab)
        return jnp.sqrt(psum[:, 0, 0] @ onehot)

    return jax.jit(composite)


# ----------------------------------------------------------------------------
# BaseModel equivalent: parameter store + EMA buffers + per-parameter norms,
# all held in a single pre-padded (R_total, 512) slab.
# ----------------------------------------------------------------------------
class BaseModelPallas:
    PARAM_SHAPES = {"fc.weight": (32, 128), "fc.bias": (128,)}

    def __init__(self, weight_scale=0.1, avg=0.999):
        self.avg_arr = jnp.full((1,), avg, jnp.float32)     # SMEM scalar input

        # Parameter init: parm.fill_(0) or parm.normal_(0, weight_scale).
        key = jax.random.PRNGKey(0)
        self.params = {}
        for name, shape in self.PARAM_SHAPES.items():
            key, sub = jax.random.split(key)
            if weight_scale == 0:
                self.params[name] = jnp.zeros(shape, jnp.float32)
            else:
                self.params[name] = weight_scale * jax.random.normal(sub, shape, jnp.float32)

        # Static combined-slab layout (built once).
        self.names = list(self.PARAM_SHAPES)
        rows = {n: _param_rows(math.prod(self.PARAM_SHAPES[n])) for n in self.names}
        self.block_rows = _choose_block_rows(list(rows.values()))
        self.layout, off = {}, 0
        for n in self.names:
            shape = self.PARAM_SHAPES[n]
            self.layout[n] = dict(shape=shape, nelem=math.prod(shape),
                                  row_start=off, rows=rows[n])
            off += rows[n]
        self.total_rows = off
        self.num_blocks = self.total_rows // self.block_rows

        # block -> parameter one-hot matrix for the per-parameter segment sum.
        b2p = []
        for j, n in enumerate(self.names):
            b2p += [j] * (self.layout[n]["rows"] // self.block_rows)
        onehot = jnp.zeros((self.num_blocks, len(self.names)), jnp.float32)
        self.onehot = onehot.at[jnp.arange(self.num_blocks), jnp.array(b2p)].set(1.0)

        # Pack live params into the combined slab; clone as EMA buffers
        # (register_buffer(name + '_avg', parm.clone().detach())).
        self.parm_slab = self._pack_all()
        self.pavg_slab = jnp.array(self.parm_slab)
        self.norms = {}

    # ---- slab packing (setup path only; hot path never pads/concats) -------
    def _padded_block(self, name, value):
        lay = self.layout[name]
        flat = jnp.asarray(value, jnp.float32).reshape(-1)
        pad = lay["rows"] * LANES - lay["nelem"]
        if pad:
            flat = jnp.concatenate([flat, jnp.zeros((pad,), jnp.float32)])
        return flat.reshape(lay["rows"], LANES)

    def _pack_all(self):
        return jnp.concatenate(
            [self._padded_block(n, self.params[n]) for n in self.names], axis=0)

    def set_param(self, name, value):
        self.params[name] = value
        lay = self.layout[name]
        self.parm_slab = jax.lax.dynamic_update_slice(
            self.parm_slab, self._padded_block(name, value), (lay["row_start"], 0))

    def get_buffer(self, name):
        lay = self.layout[name]
        blk = self.pavg_slab[lay["row_start"]:lay["row_start"] + lay["rows"]]
        return blk.reshape(-1)[: lay["nelem"]].reshape(lay["shape"])

    # ---- hot paths ----------------------------------------------------------
    def average_iterates(self):
        # pavg <- avg*pavg + (1-avg)*parm; |parm| computed for free in the same pass.
        fused = _build_fused(self.total_rows, LANES, self.block_rows, self.num_blocks)
        new_pavg, norms = fused(self.avg_arr, self.pavg_slab, self.parm_slab, self.onehot)
        self.pavg_slab = new_pavg
        self.norms = {n: norms[j] for j, n in enumerate(self.names)}

    def param_norms(self):
        # update_status path: parm.norm() per parameter, one batched call.
        norm_fn = _build_norms(self.total_rows, LANES, self.block_rows, self.num_blocks)
        norms = norm_fn(self.parm_slab, self.onehot)
        return {n: norms[j] for j, n in enumerate(self.names)}

    def forward(self, x):
        # TODO(synk): abstract in BaseModel (raise NotImplementedError); nothing to run.
        raise NotImplementedError


# ----------------------------------------------------------------------------
if __name__ == "__main__":
    model = BaseModelPallas(weight_scale=0.1, avg=0.999)

    # Perturb the live parameters so the EMA actually moves (deterministic).
    key = jax.random.PRNGKey(0)
    for name in model.names:
        key, sub = jax.random.split(key)
        model.set_param(
            name,
            model.params[name]
            + 0.01 * jax.random.normal(sub, model.PARAM_SHAPES[name], jnp.float32))

    # Pure-JAX reference, computed BEFORE running (pavg slab is donated in place).
    avg = jnp.float32(0.999)
    ref_pavg, ref_norm = {}, {}
    for name in model.names:
        p = model.params[name]
        pavg = model.get_buffer(name)          # initial buffer (= unperturbed init)
        for _ in range(3):
            pavg = avg * pavg + (1.0 - avg) * p
        ref_pavg[name] = pavg
        ref_norm[name] = jnp.linalg.norm(p.reshape(-1))

    # Run 3 fused EMA+norm updates (one pallas_call each), then standalone norms.
    for _ in range(3):
        model.average_iterates()
    norms_fused = dict(model.norms)
    norms_standalone = model.param_norms()

    # Block on results.
    jax.block_until_ready(model.pavg_slab)
    for v in list(norms_fused.values()) + list(norms_standalone.values()):
        jax.block_until_ready(v)

    # Check against the reference.
    ok = True
    for name in model.names:
        got = model.get_buffer(name)
        ok &= bool(jnp.allclose(ref_pavg[name], got, rtol=1e-6, atol=1e-6))
        ok &= bool(jnp.allclose(ref_norm[name], norms_fused[name], rtol=1e-5, atol=1e-6))
        ok &= bool(jnp.allclose(ref_norm[name], norms_standalone[name], rtol=1e-5, atol=1e-6))

    print("KERNEL_OK" if ok else "MISMATCH")
</pallas_src>

<mosaic_0001>
module attributes {stable_mosaic.version = 11 : i64} {
  func.func @_fused_ema_norm_kernel(%arg0: i32, %arg1: memref<1xf32, #tpu.memory_space<smem>>, %arg2: memref<8x512xf32, #tpu.memory_space<vmem>>, %arg3: memref<8x512xf32, #tpu.memory_space<vmem>>, %arg4: memref<8x512xf32, #tpu.memory_space<vmem>>, %arg5: memref<1x8x128xf32, #tpu.memory_space<vmem>>) attributes {dimension_semantics = [#tpu.dimension_semantics<parallel>], iteration_bounds = array<i64: 2>, scalar_prefetch = 0 : i64, scratch_operands = 0 : i64, tpu.core_type = #tpu.core_type<tc>, window_params = [{transform_indices = @transform_0, window_bounds = array<i64: 1>}, {transform_indices = @transform_1, window_bounds = array<i64: 8, 512>}, {transform_indices = @transform_2, window_bounds = array<i64: 8, 512>}, {transform_indices = @transform_3, window_bounds = array<i64: 8, 512>}, {transform_indices = @transform_4, window_bounds = array<i64: 1, 8, 128>}]} {
    %c0 = arith.constant 0 : index
    %0 = memref.load %arg1[%c0] : memref<1xf32, #tpu.memory_space<smem>>
    %c0_0 = arith.constant 0 : index
    %c0_1 = arith.constant 0 : index
    %1 = vector.load %arg3[%c0_0, %c0_1] : memref<8x512xf32, #tpu.memory_space<vmem>>, vector<8x512xf32>
    %c0_2 = arith.constant 0 : index
    %c0_3 = arith.constant 0 : index
    %2 = vector.load %arg2[%c0_2, %c0_3] : memref<8x512xf32, #tpu.memory_space<vmem>>, vector<8x512xf32>
    %3 = vector.broadcast %0 : f32 to vector<8x512xf32>
    %4 = arith.mulf %3, %2 : vector<8x512xf32>
    %cst = arith.constant 1.000000e+00 : f32
    %5 = arith.subf %cst, %0 : f32
    %6 = vector.broadcast %5 : f32 to vector<8x512xf32>
    %7 = arith.mulf %6, %1 : vector<8x512xf32>
    %8 = arith.addf %4, %7 : vector<8x512xf32>
    %c0_4 = arith.constant 0 : index
    %c0_5 = arith.constant 0 : index
    %9 = vector.load %arg4[%c0_4, %c0_5] : memref<8x512xf32, #tpu.memory_space<vmem>>, vector<8x512xf32>
    tpu.vector_store %arg4[%c0_4, %c0_5], %8 {strides = array<i32>} : memref<8x512xf32, #tpu.memory_space<vmem>>, vector<8x512xf32>,
    %10 = arith.mulf %1, %1 : vector<8x512xf32>
    %11 = vector.shape_cast %10 : vector<8x512xf32> to vector<1x8x512xf32>
    %cst_6 = arith.constant dense<0.000000e+00> : vector<1xf32>
    %12 = vector.multi_reduction <add>, %11, %cst_6 [1, 2] : vector<1x8x512xf32> to vector<1xf32>
    %13 = vector.shape_cast %12 : vector<1xf32> to vector<1x1x1xf32>
    %14 = vector.extract %13[0, 0, 0] : f32 from vector<1x1x1xf32>
    %cst_7 = arith.constant 0.000000e+00 : f32
    %15 = vector.broadcast %cst_7 : f32 to vector<1x8x128xf32>
    %16 = vector.broadcast %14 : f32 to vector<1x8x128xf32>
    %17 = arith.addf %15, %16 : vector<1x8x128xf32>
    %c0_8 = arith.constant 0 : index
    %c0_9 = arith.constant 0 : index
    %c0_10 = arith.constant 0 : index
    %18 = vector.load %arg5[%c0_8, %c0_9, %c0_10] : memref<1x8x128xf32, #tpu.memory_space<vmem>>, vector<1x8x128xf32>
    tpu.vector_store %arg5[%c0_8, %c0_9, %c0_10], %17 {strides = array<i32>} : memref<1x8x128xf32, #tpu.memory_space<vmem>>, vector<1x8x128xf32>,
    return
  }
  func.func @transform_0(%arg0: i32) -> i32 {
    %c0_i32 = arith.constant 0 : i32
    %c0_i32_0 = arith.constant 0 : i32
    return %c0_i32 : i32
  }
  func.func @transform_1(%arg0: i32) -> (i32, i32) {
    %c0_i32 = arith.constant 0 : i32
    %c0_i32_0 = arith.constant 0 : i32
    return %arg0, %c0_i32 : i32, i32
  }
  func.func @transform_2(%arg0: i32) -> (i32, i32) {
    %c0_i32 = arith.constant 0 : i32
    %c0_i32_0 = arith.constant 0 : i32
    return %arg0, %c0_i32 : i32, i32
  }
  func.func @transform_3(%arg0: i32) -> (i32, i32) {
    %c0_i32 = arith.constant 0 : i32
    %c0_i32_0 = arith.constant 0 : i32
    return %arg0, %c0_i32 : i32, i32
  }
  func.func @transform_4(%arg0: i32) -> (i32, i32, i32) {
    %c0_i32 = arith.constant 0 : i32
    %c0_i32_0 = arith.constant 0 : i32
    %c0_i32_1 = arith.constant 0 : i32
    return %arg0, %c0_i32, %c0_i32_0 : i32, i32, i32
  }
}

</mosaic_0001>

<bundles_post_ra>
// kernel: composite.1
= control target key start
LH: loop header
LB: loop body
LE: loop exit
PB: predicated region body
PF: predicated region fallthrough
CT: control target
= control target key end

     0   :  { %s901_s0 = inlined_call_operand.<no memory space> [shape: f32[1], index: 0, kind: input, shape index: {}]   ;;  %s902_s1 = inlined_call_operand.hbm [shape: f32[16,512], index: 1, kind: input, shape index: {}, may-alias: {1,3}]   ;;  %s903_s2 = inlined_call_operand.hbm [shape: f32[16,512], index: 2, kind: input, shape index: {}]   ;;  %s904_s3 = inlined_call_operand.hbm [shape: f32[16,512], index: 3, kind: output, shape index: {0}, may-alias: {1,3}]   ;;  %s905_s4 = inlined_call_operand.vmem [shape: f32[2,8,128], index: 4, kind: output, shape index: {1}]  }
   0x1   :  { %10 = sst [smem:[#allocation2]] %s901_s0 }
   0x2   :  { %11 = vsyncpa [#allocation4], 0 }
   0x3   :  { %13 = vsyncpa [#allocation4 + $0x1], 0 }
   0x4   :  { %14 = vsyncpa [#allocation7], 0 }
   0x5   :  { %16 = vsyncpa [#allocation7 + $0x1], 0 }
   0x6   :  { %17 = vsyncpa [#allocation5], 0 }
   0x7   :  { %19 = vsyncpa [#allocation5 + $0x1], 0  ;;  %s688_s17 = smov 0   ;;  %s690_s18 = smov 0  }
   0x8   :  { %s692_s19 = smov 0   ;;  %s694_s20 = smov 0  }
   0x9 LB: > { %s709_s0 = sadd.s32 4294967295, %s655_s20   ;;  %s450_s21 = sadd.s32 4294967294, %s655_s20   ;;  %s655_s20 = sphi %s694_s20, %s924_s20   ;;  %s651_s19 = sphi %s692_s19, %s923_s19   ;;  %s647_s18 = sphi %s690_s18, %s922_s18   ;;  %s643_s17 = sphi %s688_s17, %s921_s17  }
   0xa   : > { %s713_s22 = sadd.s32 1, %s655_s20   ;;  %s53_s23 = sadd.s32 1, %s651_s19 }
   0xb   : > { %s50_s24 = ssub.s32 %s655_s20, %s713_s22  ;;  %p60_p0 = scmp.ne.s32.totalorder %s651_s19, %s647_s18 }
   0xc   : > { %p51_p1 = scmp.eq.s32.totalorder %s50_s24, 0  ;;  %p61_p2 = scmp.eq.s32.totalorder %s655_s20, 0 }
   0xd   : > { %p66_p3 = scmp.ne.s32.totalorder %s647_s18, %s643_s17  ;;  %p67_p4 = scmp.eq.s32.totalorder %s709_s0, 0 }
   0xe   : > { %s725_s25 = scalar_select %p51_p1, %s651_s19, %s53_s23  }
   0xf   : > { %p727_p5 = por %p61_p2, %p60_p0  ;;  %p731_p6 = por %p67_p4, %p66_p3 }
  0x10   : > { %p116_p7 = scmp.eq.s32.totalorder %s709_s0, 1  ;;  %p122_p8 = scmp.eq.s32.totalorder %s450_s21, 1 }
  0x11   : > { %s909_s27 = scalar_select %p731_p6, 1, 0 }
  0x12   : > { %p491_p10 = scmp.lt.s32.totalorder %s655_s20, 2  ;;  %p738_p11 = por %p116_p7, %p60_p0 }
  0x13   : > { %p742_p12 = por %p122_p8, %p66_p3  ;;  %s747_s30 = sand.u32 1, %s651_s19  }
  0x14   : > { %s910_s28 = scalar_select %p738_p11, 1, 0 }
  0x15   : > { %s911_s29 = scalar_select %p742_p12, 1, 0 }
  0x16   : > { %s469_s5 = sshll.u32 %s655_s20, 9  ;;  %s453_s6 = sshll.u32 %s747_s30, 5 }
  0x17   : > { %s756_s9 = scalar_lea.hbm %s902_s1, %s469_s5  ;;  %s175_s10 = scalar_lea.vmem [#allocation3], %s453_s6 }
  0x18   : > { %s183_s11 = sshll.u32 %s175_s10, 4  ;;  %p762_p13 = pnand %p491_p10, %p727_p5  ;;  %s766_s11 = int_to_ptr.vmem [resolvable:$true] %s183_s11 }
  0x19   : > { %s172_s13 = scalar_lea.sflag [#allocation4], %s747_s30  ;;  %s525_s14 = scalar_lea.hbm %s756_s9, 512 }
  0x1a   : > { %p526_p2 = scmp.ne.s32.totalorder %s756_s9, %s525_s14  ;;  %p527_p3 = pneg %p762_p13 }
  0x1b   : > { %s530_s21 = scalar_lea.hbm %s902_s1, 1024  ;;  %p531_p5 = scmp.lt.u32.totalorder %s756_s9, %s902_s1 }
  0x1c   : > { %p528_p4 = pnand %p527_p3, %p526_p2  ;;  %p532_p8 = scmp.lt.u32.totalorder %s530_s21, %s525_s14 }
  0x1d   : > { %p534_p9 = scmp.lt.u32.totalorder %s525_s14, %s756_s9 }
  0x1e   : > { %p529_p7 = pneg %p528_p4  ;;  %p533_p10 = por %p532_p8, %p531_p5 }
  0x20   : > { %p535_p0 = por %p534_p9, %p533_p10 }
  0x22   : > { %p536_p1 = pnand %p535_p0, %p529_p7 }
  0x24   : > { %539 = shalt.err (!%p536_p1)
}
  0x25   : > { %s540_s26 = scalar_lea.vmem %s766_s11, 512  ;;  %s657_s7 = smov [#allocation3]  }
  0x26   : > { %p541_p2 = scmp.ne.s32.totalorder %s766_s11, %s540_s26  ;;  %s545_s8 = sshll.u32 %s657_s7, 4  ;;  %s546_s8 = int_to_ptr.vmem [resolvable:$false] %s545_s8 }
  0x27   : > { %s547_s10 = scalar_lea.vmem %s546_s8, 1024  ;;  %p548_p11 = scmp.lt.s32.totalorder %s766_s11, %s546_s8 }
  0x28   : > { %p543_p4 = pnand %p541_p2, %p527_p3  ;;  %p549_p5 = scmp.lt.s32.totalorder %s547_s10, %s540_s26 }
  0x2a   : > { %p544_p12 = pneg %p543_p4  ;;  %p550_p8 = por %p549_p5, %p548_p11 }
  0x2c   : > { %p551_p9 = pnand %p550_p8, %p544_p12 }
  0x2e   : > { %554 = shalt.err (!%p551_p9)
}
  0x2f   : > { %483 = dma.hbm_to_vmem [thread:$0]  (!%p762_p13), %s756_s9, 512, %s766_s11, %s172_s13  }
  0x30   : > { %p913_p0 = scmp.lt.s32.totalorder %s655_s20, 3  ;;  %p914_p1 = scmp.ge.s32.totalorder %s655_s20, 1 }
  0x31   : > { %s809_s21 = scalar_lea.hbm %s903_s2, %s469_s5  ;;  %s194_s23 = scalar_lea.vmem [#allocation6], %s453_s6 }
  0x32   : > { %p800_p7 = pnand %p914_p1, %p913_p0  ;;  %s202_s24 = sshll.u32 %s194_s23, 4  ;;  %s203_s24 = int_to_ptr.vmem [resolvable:$true] %s202_s24 }
  0x33   : > { %s191_s9 = scalar_lea.sflag [#allocation7], %s747_s30  ;;  %s555_s11 = scalar_lea.hbm %s809_s21, 512 }
  0x34   : > { %s915_s14 = scalar_select %p800_p7, 1, 0 }
  0x35   : > { %p556_p11 = scmp.ne.s32.totalorder %s809_s21, %s555_s11  ;;  %s560_s5 = scalar_lea.hbm %s903_s2, 1024 }
  0x36   : > { %p561_p2 = scmp.lt.u32.totalorder %s809_s21, %s903_s2  ;;  %p562_p4 = scmp.lt.u32.totalorder %s560_s5, %s555_s11 }
  0x37   : > { %p558_p12 = pnand %p556_p11, %p527_p3  ;;  %p564_p8 = scmp.lt.u32.totalorder %s555_s11, %s809_s21 }
  0x38   : > { %p563_p5 = por %p562_p4, %p561_p2 }
  0x39   : > { %p559_p10 = pneg %p558_p12 }
  0x3a   : > { %p565_p9 = por %p564_p8, %p563_p5 }
  0x3c   : > { %p566_p0 = pnand %p565_p9, %p559_p10 }
  0x3e   : > { %569 = shalt.err (!%p566_p0)
}
  0x3f   : > { %s570_s30 = scalar_lea.vmem %s203_s24, 512  ;;  %s658_s6 = smov [#allocation6]  }
  0x40   : > { %p571_p1 = scmp.ne.s32.totalorder %s203_s24, %s570_s30  ;;  %s575_s10 = sshll.u32 %s658_s6, 4  ;;  %s576_s10 = int_to_ptr.vmem [resolvable:$false] %s575_s10 }
  0x41   : > { %s577_s15 = scalar_lea.vmem %s576_s10, 1024  ;;  %p578_p6 = scmp.lt.s32.totalorder %s203_s24, %s576_s10 }
  0x42   : > { %p573_p11 = pnand %p571_p1, %p527_p3  ;;  %p579_p7 = scmp.lt.s32.totalorder %s577_s15, %s570_s30 }
  0x44   : > { %p574_p12 = pneg %p573_p11  ;;  %p580_p2 = por %p579_p7, %p578_p6 }
  0x46   : > { %p581_p4 = pnand %p580_p2, %p574_p12 }
  0x48   : > { %584 = shalt.err (!%p581_p4)
}
  0x49   : > { %486 = dma.hbm_to_vmem [thread:$0]  (!%p762_p13), %s809_s21, 512, %s203_s24, %s191_s9  }
  0x4a   : > { %p916_p10 = scmp.ne.s32.totalorder %s915_s14, 0 }
  0x4b   : > { %s836_s16 = sand.u32 (!%p916_p10), 1, %s647_s18   ;;  %p917_p6 = scmp.ne.s32.totalorder (!%p916_p10), %s909_s27, 0 }
  0x4c   : > { %211 = sbr.rel (%p916_p10) target bundleno = 302 (0x12e), region = 32  ;;  %s839_s23 = sshll.u32 (!%p916_p10), %s836_s16, 5 }
  0x4d   : > { %s214_s11 = scalar_lea.sflag (!%p916_p10), [#allocation4], %s836_s16  ;;  %s217_s13 = scalar_lea.vmem (!%p916_p10), [#allocation3], %s839_s23 }
  0x53   : > { %630 = dma.done.wait (%p917_p6), %s214_s11, 512  }
  0x54   : > { %632 = vsyncadd (%p917_p6), %s214_s11, 4294966784  ;;  %s223_s12 = scalar_lea.sflag [#allocation7], %s836_s16  ;;  %s226_s14 = scalar_lea.vmem [#allocation6], %s839_s23 }
  0x55   : > { %634 = dma.done.wait (%p917_p6), %s223_s12, 512  }
  0x56   : > { %636 = vsyncadd (%p917_p6), %s223_s12, 4294966784  ;;  %s264_s21 = sld [smem:[#allocation2]]  ;;  %v265_v0 = vld [vmem:[%s226_s14] sm:$0xff]  ;;  %v266_v1 = vld [vmem:[%s226_s14 + $0x8] sm:$0xff]  ;;  %s253_s27 = scalar_lea.vmem [#allocation8], %s839_s23 }
  0x57   : > { %v267_v2 = vld [vmem:[%s226_s14 + $0x10] sm:$0xff]  ;;  %v268_v4 = vld [vmem:[%s226_s14 + $0x18] sm:$0xff]  ;;  %v269_v5 = vld [vmem:[%s217_s13] sm:$0xff]  ;;  %v292_v7 = vmul.f32 %v265_v0, %v265_v0  ;;  %v293_v8 = vmul.f32 %v266_v1, %v266_v1  ;;  %s471_s9 = sshll.u32 %s709_s0, 9  ;;  %s330_s26 = sshll.u32 %s253_s27, 4  ;;  %s331_s26 = int_to_ptr.vmem [resolvable:$true] %s330_s26 }
  0x58   : > { %v270_v6 = vld [vmem:[%s217_s13 + $0x8] sm:$0xff]  ;;  %v271_v9 = vld [vmem:[%s217_s13 + $0x10] sm:$0xff]  ;;  %v272_v10 = vld [vmem:[%s217_s13 + $0x18] sm:$0xff]  ;;  %v294_v14 = vmul.f32 %v267_v2, %v267_v2  ;;  %v295_v21 = vmul.f32 %v268_v4, %v268_v4  ;;  %s858_s8 = scalar_lea.hbm %s904_s3, %s471_s9  ;;  %s312_s30 = scalar_lea.sflag [#allocation5], %s836_s16 }
  0x59   : > { %v296_v22 = vadd.f32 %v293_v8, %v292_v7  ;;  %s585_s6 = scalar_lea.vmem %s331_s26, 512  ;;  %p918_p3 = scmp.ne.s32.totalorder %s910_s28, 0 }
  0x5a   : > { %p586_p13 = scmp.ne.s32.totalorder %s331_s26, %s585_s6  ;;  %s659_s10 = smov [#allocation8]  }
  0x5b   : > { %v297_v27 = vadd.f32 %v296_v22, %v294_v14  ;;  %s589_s15 = sshll.u32 %s659_s10, 4  ;;  %s590_s15 = int_to_ptr.vmem [resolvable:$false] %s589_s15 }
  0x5c   : > { %v273_v3 = vstv %s264_s21  ;;  %s278_s24 = ssub.f32 1.0, %s264_s21  ;;  %p587_p7 = pnand %p586_p13, %p918_p3 }
  0x5d   : > { %v274_v11 = vmul.f32 %v273_v3, %v269_v5  ;;  %v275_v12 = vmul.f32 %v273_v3, %v270_v6  ;;  %v276_v15 = vmul.f32 %v273_v3, %v271_v9  ;;  %v277_v16 = vmul.f32 %v273_v3, %v272_v10  ;;  %s591_s23 = scalar_lea.vmem %s590_s15, 1024  ;;  %p592_p8 = scmp.lt.s32.totalorder %s331_s26, %s590_s15 }
  0x5e   : > { %v279_v13 = vstv %s278_s24  ;;  %v298_v28 = vadd.f32 %v297_v27, %v295_v21  ;;  %p588_p5 = pneg %p587_p7  ;;  %p593_p9 = scmp.lt.s32.totalorder %s591_s23, %s585_s6 }
  0x5f   : > { %v280_v17 = vmul.f32 %v279_v13, %v265_v0  ;;  %v281_v18 = vmul.f32 %v279_v13, %v266_v1  ;;  %v282_v19 = vmul.f32 %v279_v13, %v267_v2  ;;  %v283_v20 = vmul.f32 %v279_v13, %v268_v4 }
  0x60   : > { %299 = vadd.xlane.f32.xlu0 %v298_v28  ;;  %p594_p0 = por %p593_p9, %p592_p8 }
  0x61   : > { %v284_v23 = vadd.f32 %v280_v17, %v274_v11  ;;  %v285_v24 = vadd.f32 %v281_v18, %v275_v12  ;;  %v286_v25 = vadd.f32 %v282_v19, %v276_v15  ;;  %v287_v26 = vadd.f32 %v283_v20, %v277_v16 }
  0x62   : > { %p595_p1 = pnand %p594_p0, %p588_p5 }
  0x63   : > { %288 = vst [vmem:[%s253_s27] sm:$0xff] %v284_v23  ;;  %289 = vst [vmem:[%s253_s27 + $0x8] sm:$0xff] %v285_v24 }
  0x64   : > { %290 = vst [vmem:[%s253_s27 + $0x10] sm:$0xff] %v286_v25  ;;  %291 = vst [vmem:[%s253_s27 + $0x18] sm:$0xff] %v287_v26 }
  0x65   : > { %598 = shalt.err (!%p595_p1)
}
  0x66   : > { %s599_s16 = scalar_lea.hbm %s858_s8, 512  ;;  %s603_s12 = scalar_lea.hbm %s904_s3, 1024 }
  0x67   : > { %p600_p11 = scmp.ne.s32.totalorder %s858_s8, %s599_s16  ;;  %p604_p4 = scmp.lt.u32.totalorder %s858_s8, %s904_s3 }
  0x68   : > { %p605_p10 = scmp.lt.u32.totalorder %s603_s12, %s599_s16  ;;  %p607_p13 = scmp.lt.u32.totalorder %s599_s16, %s858_s8 }
  0x69   : > { %p601_p12 = pnand %p600_p11, %p918_p3 }
  0x6a   : > { %p606_p6 = por %p605_p10, %p604_p4 }
  0x6b   : > { %p602_p2 = pneg %p601_p12 }
  0x6c   : > { %p608_p7 = por %p607_p13, %p606_p6 }
  0x6e   : > { %p609_p5 = pnand %p608_p7, %p602_p2 }
  0x70   : > { %612 = shalt.err (!%p609_p5)
}
  0x71   : > { %478 = dma.vmem_to_hbm [thread:$0]  (%p918_p3), %s331_s26, 512, %s858_s8, %s312_s30  }
  0x72   : > { %p260_p8 = scmp.lt.s32.totalorder %s709_s0, 1 }
  0x74   : > { %s926_s0 = smov (!%p260_p8, %s709_s0), 1 }
  0x75   : > { %s463_s24 = sshll.u32 %s926_s0, 3 }
  0x76   : > { %s263_s5 = scalar_lea.vmem %s905_s4, %s463_s24 }
  0xed   : > { %v300_v29 = vpop.xlane.xlu0 %299 }
  0xee   : > { %v301_v30 = vrot.slane %v300_v29, 4 }
  0xf0   : > { %v302_v31 = vadd.f32 %v301_v30, %v300_v29 }
  0xf2   : > { %v303_v32 = vrot.slane %v302_v31, 2 }
  0xf4   : > { %v304_v33 = vadd.f32 %v303_v32, %v302_v31 }
  0xf6   : > { %v305_v34 = vrot.slane %v304_v33, 1 }
  0xf8   : > { %v306_v35 = vadd.f32 %v305_v34, %v304_v33 }
  0xfa   : > { %472 = vpush %v306_v35 }
 0x12b   : > { %s473_s28 = spop %472 }
 0x12c   : > { %v308_v36 = vstv %s473_s28 }
 0x12d   : > { %310 = vst [vmem:[%s263_s5] sm:$0xff] %v308_v36 }
 0x12e PF: > { %s345_s26 = sand.u32 1, %s643_s17   ;;  %p919_p3 = scmp.ne.s32.totalorder %s911_s29, 0 }
 0x12f   : > { %p920_p9 = scmp.ge.s32.totalorder %s655_s20, 2  ;;  %s346_s7 = scalar_lea.sflag [#allocation5], %s345_s26 }
 0x131   : > { %p488_p0 = pnand %p920_p9, %p919_p3 }
 0x133   : > { %638 = dma.done.wait (!%p488_p0), %s346_s7, 512  }
 0x134   : > { %640 = vsyncadd (!%p488_p0), %s346_s7, 4294966784  ;;  %p22_p1 = scmp.ge.s32.totalorder %s713_s22, 4   ;;  %s921_s17 = smov %s647_s18 }
 0x135   : > { %s922_s18 = smov %s651_s19  ;;  %s923_s19 = smov %s725_s25 }
 0x136   : > { %s924_s20 = smov %s713_s22  ;;  %24 = sbr.rel (!%p22_p1) target bundleno = 9 (0x9), region = 102 }
 0x13d   :  { %358 = vsyncpa [#allocation4], 1 }
 0x13e   :  { %360 = vsyncpa [#allocation4 + $0x1], 1 }
 0x13f   :  { %361 = vsyncpa [#allocation7], 1 }
 0x140   :  { %363 = vsyncpa [#allocation7 + $0x1], 1 }
 0x141   :  { %364 = vsyncpa [#allocation5], 1 }
 0x142   :  { %366 = vsyncpa [#allocation5 + $0x1], 1 }

</bundles_post_ra>
